<compile_context>
chip_gen: v6e
topology: v6e:2x2x1
jax: 0.10.0
libtpu: 0.0.40
codegen_flags: <defaults>
</compile_context>

<pallas_src>
import jax
import jax.numpy as jnp
from jax.experimental import pallas as pl
from jax.experimental.pallas import tpu as pltpu


def _patch_embed_kernel(x_ref, w_ref, b_ref, o_ref):
    # x_ref: (NB, K, TM)  patch columns for this tile (NB images)
    # w_ref: (E, K)       projection weight (VMEM-resident across the grid)
    # b_ref: (E, 1)       bias, pre-cast to f32 (resident)
    # o_ref: (NB, E, TM)  output tile (lane-dense along TM)
    w = w_ref[...]
    b = b_ref[...]
    for i in range(x_ref.shape[0]):  # NB is small & static -> unrolled MXU dots
        acc = jnp.dot(w, x_ref[i], preferred_element_type=jnp.float32)
        o_ref[i] = (acc + b).astype(o_ref.dtype)


def _choose_tiles(N, M_img, K, E, itemsize, budget_bytes=12 << 20, nb_cap=8):
    """Pick (batch block NB, M tile TM).

    TM is full-extent whenever the double-buffered x+out footprint fits the
    VMEM budget (the op is step-overhead bound, not DMA bound).  When a single
    M tile covers the image, the batch axis is blocked too (NB | N, <= nb_cap).
    We always keep >= 2 grid steps when possible so both v7x TCs get work.
    """
    bytes_per_col = 2 * (K + E) * itemsize          # double-buffered x + out
    max_cols = max(128, budget_bytes // bytes_per_col)

    # M tile: full extent if it fits, else the largest 128-multiple that fits.
    tm = M_img if M_img <= max_cols else max(128, (max_cols // 128) * 128)
    n_m = pl.cdiv(M_img, tm)

    # Batch block: only worthwhile when one M tile covers the whole image.
    nb = 1
    if n_m == 1:
        nb = max(1, min(N, nb_cap, max_cols // max(M_img, 1)))
        while nb > 1 and N % nb:                    # avoid ragged batch blocks
            nb -= 1

    # Guarantee >= 2 grid steps (keeps both v7x TensorCores busy).
    if pl.cdiv(N, nb) * n_m < 2:
        if N > 1:
            nb = max(d for d in range(1, N // 2 + 1) if N % d == 0)
        elif M_img > 128:
            tm = ((pl.cdiv(M_img, 2) + 127) // 128) * 128
    return nb, tm


def patch_embed_forward(x, conv_weight, conv_bias, patch_size,
                        vmem_budget_bytes=12 << 20):
    """x: (N, C, H, W) NCHW.  conv_weight: (E, C, ph, pw) OIHW.  conv_bias: (E,)."""
    ph, pw = patch_size
    N, C, H, W = x.shape
    E = conv_weight.shape[0]

    # Pad right/bottom so H, W become multiples of patch size (matches F.pad).
    pad_w = (pw - W % pw) % pw
    pad_h = (ph - H % ph) % ph
    if pad_w or pad_h:
        x = jnp.pad(x, ((0, 0), (0, 0), (0, pad_h), (0, pad_w)))
    Hp, Wp = (H + pad_h) // ph, (W + pad_w) // pw
    M_img = Hp * Wp
    K = C * ph * pw

    out_dtype = jnp.result_type(x.dtype, conv_weight.dtype)
    itemsize = jnp.dtype(out_dtype).itemsize

    # Patch matrix (N, K, M_img):
    #   k = c*ph*pw + kh*pw + kw   (matches OIHW weight flattening)
    #   m = hp*Wp + wp             (so (E, M) reshapes straight to NCHW)
    xp = x.reshape(N, C, Hp, ph, Wp, pw)
    xp = jnp.transpose(xp, (0, 1, 3, 5, 2, 4))          # (N, C, ph, pw, Hp, Wp)
    x_km = xp.reshape(N, K, M_img).astype(out_dtype)

    w = conv_weight.reshape(E, K).astype(out_dtype)      # (E, K)
    b = conv_bias.reshape(E, 1).astype(jnp.float32)      # (E, 1), pre-cast f32

    nb, tm = _choose_tiles(N, M_img, K, E, itemsize, vmem_budget_bytes)
    grid = (pl.cdiv(N, nb), pl.cdiv(M_img, tm))

    cost = pl.CostEstimate(
        flops=2 * N * M_img * K * E,
        transcendentals=0,
        bytes_accessed=(x_km.size * x_km.dtype.itemsize
                        + w.size * w.dtype.itemsize
                        + b.size * b.dtype.itemsize
                        + N * E * M_img * itemsize),
    )

    out = pl.pallas_call(
        _patch_embed_kernel,
        out_shape=jax.ShapeDtypeStruct((N, E, M_img), out_dtype),
        grid_spec=pltpu.PrefetchScalarGridSpec(
            num_scalar_prefetch=0,
            grid=grid,
            in_specs=[
                # x: NB images, full K, one M tile.
                pl.BlockSpec((nb, K, tm), lambda n, i: (n, 0, i)),
                # weight / bias: constant index -> stay resident in VMEM.
                pl.BlockSpec((E, K), lambda n, i: (0, 0)),
                pl.BlockSpec((E, 1), lambda n, i: (0, 0)),
            ],
            out_specs=pl.BlockSpec((nb, E, tm), lambda n, i: (n, 0, i)),
        ),
        compiler_params=pltpu.CompilerParams(
            dimension_semantics=("parallel", "parallel"),
            # Let XLA fuse the patch-extraction reshape/transpose into the
            # x operand (avoids materializing x_km in HBM).
            allow_input_fusion=[True, False, False],
        ),
        cost_estimate=cost,
    )(x_km, w, b)

    # (N, E, Hp*Wp) -> (N, E, Hp, Wp): pure reshape, no transpose, no slice.
    return out.reshape(N, E, Hp, Wp)


if __name__ == "__main__":
    patch_size = (4, 4)
    in_chans = 3
    embed_dim = 32

    key = jax.random.PRNGKey(0)
    kx, kw, kb = jax.random.split(key, 3)
    conv_weight = (
        jax.random.normal(kw, (embed_dim, in_chans, *patch_size), dtype=jnp.float32)
        * 0.02
    )
    conv_bias = jax.random.normal(kb, (embed_dim,), dtype=jnp.float32) * 0.02

    def reference(xin):
        return jax.lax.conv_general_dilated(
            xin, conv_weight,
            window_strides=patch_size,
            padding="VALID",
            dimension_numbers=("NCHW", "OIHW", "NCHW"),
        ) + conv_bias.reshape(1, embed_dim, 1, 1)

    # Case 1: H, W divisible by patch size.
    N, H, W = 2, 16, 16
    x = jax.random.normal(kx, (N, in_chans, H, W), dtype=jnp.float32)
    out = jax.block_until_ready(patch_embed_forward(x, conv_weight, conv_bias, patch_size))
    assert out.shape == (N, embed_dim, 4, 4), out.shape
    assert jnp.allclose(out, reference(x), atol=1e-4, rtol=1e-4), "mismatch vs conv reference"

    # Case 2: H, W NOT divisible by patch size (exercises the F.pad path).
    x2 = jax.random.normal(kx, (N, in_chans, 18, 18), dtype=jnp.float32)
    out2 = jax.block_until_ready(patch_embed_forward(x2, conv_weight, conv_bias, patch_size))
    ref2 = reference(jnp.pad(x2, ((0, 0), (0, 0), (0, 2), (0, 2))))
    assert out2.shape == (N, embed_dim, 5, 5), out2.shape
    assert jnp.allclose(out2, ref2, atol=1e-4, rtol=1e-4), "mismatch vs padded conv reference"

    # Case 3: bf16 model dtype flows through (bf16 in/out, f32 MXU accumulation).
    out_bf16 = jax.block_until_ready(
        patch_embed_forward(
            x.astype(jnp.bfloat16),
            conv_weight.astype(jnp.bfloat16),
            conv_bias.astype(jnp.bfloat16),
            patch_size,
        )
    )
    assert out_bf16.dtype == jnp.bfloat16
    assert jnp.allclose(out_bf16.astype(jnp.float32), reference(x), atol=5e-2, rtol=5e-2), \
        "bf16 path mismatch"

    # Case 4: batch blocking (N=4 -> NB=2, two parallel grid steps along batch).
    x4 = jax.random.normal(kx, (4, in_chans, 16, 16), dtype=jnp.float32)
    out4 = jax.block_until_ready(patch_embed_forward(x4, conv_weight, conv_bias, patch_size))
    assert out4.shape == (4, embed_dim, 4, 4), out4.shape
    assert jnp.allclose(out4, reference(x4), atol=1e-4, rtol=1e-4), "batch-blocked path mismatch"

    # Case 5: N=1 with M tiling (M_img=225 -> TM=128, ragged 2nd tile; v7x split path).
    x5 = jax.random.normal(kx, (1, in_chans, 60, 60), dtype=jnp.float32)
    out5 = jax.block_until_ready(patch_embed_forward(x5, conv_weight, conv_bias, patch_size))
    assert out5.shape == (1, embed_dim, 15, 15), out5.shape
    assert jnp.allclose(out5, reference(x5), atol=1e-4, rtol=1e-4), "M-tiled path mismatch"

    print("KERNEL_OK")
</pallas_src>

<mosaic_0001>
module attributes {stable_mosaic.version = 11 : i64} {
  func.func @_patch_embed_kernel(%arg0: i32, %arg1: i32, %arg2: memref<1x48x16xf32, #tpu.memory_space<vmem>>, %arg3: memref<32x48xf32, #tpu.memory_space<vmem>>, %arg4: memref<32x1xf32, #tpu.memory_space<vmem>>, %arg5: memref<1x32x16xf32, #tpu.memory_space<vmem>>) attributes {dimension_semantics = [#tpu.dimension_semantics<parallel>, #tpu.dimension_semantics<parallel>], iteration_bounds = array<i64: 2, 1>, scalar_prefetch = 0 : i64, scratch_operands = 0 : i64, tpu.core_type = #tpu.core_type<tc>, window_params = [{transform_indices = @transform_0, window_bounds = array<i64: 1, 48, 16>}, {pipeline_mode = #tpu.pipeline_mode<synchronous>, transform_indices = @transform_1, window_bounds = array<i64: 32, 48>}, {pipeline_mode = #tpu.pipeline_mode<synchronous>, transform_indices = @transform_2, window_bounds = array<i64: 32, 1>}, {transform_indices = @transform_3, window_bounds = array<i64: 1, 32, 16>}]} {
    %c0 = arith.constant 0 : index
    %c0_0 = arith.constant 0 : index
    %0 = vector.load %arg3[%c0, %c0_0] : memref<32x48xf32, #tpu.memory_space<vmem>>, vector<32x48xf32>
    %c0_1 = arith.constant 0 : index
    %c0_2 = arith.constant 0 : index
    %1 = vector.load %arg4[%c0_1, %c0_2] : memref<32x1xf32, #tpu.memory_space<vmem>>, vector<32x1xf32>
    %c0_3 = arith.constant 0 : index
    %c0_4 = arith.constant 0 : index
    %c0_5 = arith.constant 0 : index
    %2 = vector.load %arg2[%c0_3, %c0_4, %c0_5] : memref<1x48x16xf32, #tpu.memory_space<vmem>>, vector<1x48x16xf32>
    %3 = vector.shape_cast %2 : vector<1x48x16xf32> to vector<48x16xf32>
    %cst = arith.constant dense<0.000000e+00> : vector<32x16xf32>
    %4 = tpu.matmul %0, %3, %cst {dimension_numbers = #tpu.dot_dimension_numbers<[1], [0], [0], [1], [0, 0, 1, 1], [], []>} : vector<32x48xf32>, vector<48x16xf32>, vector<32x16xf32> -> vector<32x16xf32>
    %5 = vector.broadcast %1 : vector<32x1xf32> to vector<32x16xf32>
    %6 = arith.addf %4, %5 : vector<32x16xf32>
    %c0_6 = arith.constant 0 : index
    %c0_7 = arith.constant 0 : index
    %c0_8 = arith.constant 0 : index
    %7 = vector.load %arg5[%c0_6, %c0_7, %c0_8] : memref<1x32x16xf32, #tpu.memory_space<vmem>>, vector<1x32x16xf32>
    %8 = vector.shape_cast %7 : vector<1x32x16xf32> to vector<32x16xf32>
    %9 = vector.shape_cast %6 : vector<32x16xf32> to vector<1x32x16xf32>
    tpu.vector_store %arg5[%c0_6, %c0_7, %c0_8], %9 {strides = array<i32>} : memref<1x32x16xf32, #tpu.memory_space<vmem>>, vector<1x32x16xf32>,
    return
  }
  func.func @transform_0(%arg0: i32, %arg1: i32) -> (i32, i32, i32) {
    %c0_i32 = arith.constant 0 : i32
    %c0_i32_0 = arith.constant 0 : i32
    return %arg0, %c0_i32, %arg1 : i32, i32, i32
  }
  func.func @transform_1(%arg0: i32, %arg1: i32) -> (i32, i32) {
    %c0_i32 = arith.constant 0 : i32
    %c0_i32_0 = arith.constant 0 : i32
    %c0_i32_1 = arith.constant 0 : i32
    return %c0_i32, %c0_i32_0 : i32, i32
  }
  func.func @transform_2(%arg0: i32, %arg1: i32) -> (i32, i32) {
    %c0_i32 = arith.constant 0 : i32
    %c0_i32_0 = arith.constant 0 : i32
    %c0_i32_1 = arith.constant 0 : i32
    return %c0_i32, %c0_i32_0 : i32, i32
  }
  func.func @transform_3(%arg0: i32, %arg1: i32) -> (i32, i32, i32) {
    %c0_i32 = arith.constant 0 : i32
    %c0_i32_0 = arith.constant 0 : i32
    return %arg0, %c0_i32, %arg1 : i32, i32, i32
  }
}

</mosaic_0001>

<bundles_post_ra>
// kernel: tpu_custom_call.1
= control target key start
LH: loop header
LB: loop body
LE: loop exit
PB: predicated region body
PF: predicated region fallthrough
CT: control target
= control target key end

     0   :  { %s550_s12 = smov 0   ;;  %s552_s13 = smov 0   ;;  %s615_s0 = inlined_call_operand.vmem [shape: f32[2,48,16], index: 0, kind: input, shape index: {}]   ;;  %s616_s1 = inlined_call_operand.vmem [shape: f32[32,48], index: 1, kind: input, shape index: {}]   ;;  %s617_s2 = inlined_call_operand.vmem [shape: f32[32,1], index: 2, kind: input, shape index: {}]   ;;  %s618_s3 = inlined_call_operand.vmem [shape: f32[2,32,16], index: 3, kind: output, shape index: {}]  }
   0x1   :  { %s554_s14 = smov 0  }
   0x2 LB: > { %s25_s15 = sadd.s32 1, %s523_s13  ;;  %p426_p0 = scmp.ge.s32.totalorder %s527_s14, 1  ;;  %s527_s14 = sphi %s554_s14, %s13_s14   ;;  %s523_s13 = sphi %s552_s13, %s620_s13   ;;  %s519_s12 = sphi %s550_s12, %s619_s12  }
   0x3   : > { %p27_p1 = scmp.ge.s32.totalorder %s25_s15, 2  ;;  %p156_p2 = scmp.lt.s32.totalorder %s527_s14, 3 }
   0x5   : > { %s622_s15 = smov (%p27_p1, %s25_s15), 0  ;;  %p157_p3 = pnand %p426_p0, %p156_p2 }
   0x6   : > { %p186_p4 = scmp.lt.s32.totalorder (!%p157_p3), %s519_s12, 1 }
   0x7   : > { %160 = sbr.rel (%p157_p3) target bundleno = 228 (0xe4), region = 32 }
   0xc   : > { %v202_v0 = vld [vmem:[%s616_s1] sm:$0xff]  ;;  %vm236_vm0 = vcmask 392192   ;;  %v204_v1 = vld [vmem:[%s616_s1 + $0x10] sm:$0xff]  ;;  %s624_s12 = smov (!%p186_p4, %s519_s12), 1  ;;  %v529_v4 = vmov 0   ;;  %v209_v5 = vld [vmem:[%s617_s2 + $0x18] sm:$0xff] }
   0xd   : > { %459 = vmatprep.mubr.msk.f32.mxu0 %vm236_vm0, %v202_v0  ;;  %462 = vmatprep.mubr.msk.f32.mxu1 %vm236_vm0, %v204_v1  ;;  %v208_v2 = vld [vmem:[%s617_s2 + $0x10] sm:$0xff]  ;;  %v206_v3 = vld [vmem:[%s617_s2] sm:$0xff]  ;;  %s477_s24 = smul.u32 48, %s624_s12  ;;  %v207_v6 = vld [vmem:[%s617_s2 + $0x8] sm:$0xff]  ;;  %s436_s9 = sshll.u32 %s624_s12, 5  ;;  %vm334_vm1 = vcmask 130048  }
   0xe   : > { %504 = vset.pattern.permute.xlu1 %v529_v4  ;;  %503 = vset.pattern.permute.xlu0 %v529_v4  ;;  %v203_v13 = vld [vmem:[%s616_s1 + $0x8] sm:$0xff]  ;;  %v205_v14 = vld [vmem:[%s616_s1 + $0x18] sm:$0xff]  ;;  %s201_s16 = scalar_lea.vmem %s618_s3, %s436_s9 }
   0xf   : > { %228 = vperm.xlu1 %504, %v208_v2   ;;  %218 = vperm.xlu0 %503, %v206_v3   ;;  %s193_s4 = scalar_lea.vmem %s615_s0, %s477_s24 }
  0x10   : > { %v215_v7 = vld [vmem:[%s193_s4 + $0x28] sm:$0xff]  ;;  %v214_v8 = vld [vmem:[%s193_s4 + $0x20] sm:$0xff]  ;;  %v213_v9 = vld [vmem:[%s193_s4 + $0x18] sm:$0xff] }
  0x11   : > { %447 = vmatprep.subr.mxu0 %v215_v7  ;;  %465 = vmatprep.subr.mxu1 %v215_v7  ;;  %v212_v10 = vld [vmem:[%s193_s4 + $0x10] sm:$0xff]  ;;  %v211_v11 = vld [vmem:[%s193_s4 + $0x8] sm:$0xff]  ;;  %v210_v12 = vld [vmem:[%s193_s4] sm:$0xff] }
  0x12   : > { %448 = vmatpush3.msra.mxu0 %v215_v7  ;;  %471 = vmatpush3.msra.mxu1 %v215_v7 }
  0x13   : > { %233 = vperm.xlu1 %504, %v209_v5   ;;  %223 = vperm.xlu0 %503, %v207_v6  }
  0x14   : > { %449 = vmatprep.subr.mxu0 %v214_v8  ;;  %466 = vmatprep.subr.mxu1 %v214_v8 }
  0x15   : > { %450 = vmatpush3.msra.mxu0 %v214_v8  ;;  %472 = vmatpush3.msra.mxu1 %v214_v8 }
  0x16   : > { %451 = vmatprep.subr.mxu0 %v213_v9  ;;  %467 = vmatprep.subr.mxu1 %v213_v9 }
  0x17   : > { %452 = vmatpush3.msra.mxu0 %v213_v9  ;;  %473 = vmatpush3.msra.mxu1 %v213_v9 }
  0x18   : > { %453 = vmatprep.subr.mxu0 %v212_v10  ;;  %468 = vmatprep.subr.mxu1 %v212_v10 }
  0x19   : > { %454 = vmatpush3.msra.mxu0 %v212_v10  ;;  %474 = vmatpush3.msra.mxu1 %v212_v10 }
  0x1a   : > { %455 = vmatprep.subr.mxu0 %v211_v11  ;;  %469 = vmatprep.subr.mxu1 %v211_v11 }
  0x1b   : > { %456 = vmatpush3.msra.mxu0 %v211_v11  ;;  %475 = vmatpush3.msra.mxu1 %v211_v11 }
  0x1c   : > { %457 = vmatprep.subr.mxu0 %v210_v12  ;;  %470 = vmatprep.subr.mxu1 %v210_v12 }
  0x1d   : > { %458 = vmatpush3.msra.mxu0 %v210_v12  ;;  %476 = vmatpush3.msra.mxu1 %v210_v12 }
  0x1e   : > { %460 = vmatmul.mubr.msk.f32.vlgmr.msra.gmra.mxu0 %vm236_vm0, %v203_v13  ;;  %463 = vmatmul.mubr.msk.f32.vlgmr.msra.gmra.mxu1 %vm236_vm0, %v205_v14 }
  0x8a   : > { %v229_v15 = vpop.permute.xlu1 %228  ;;  %v219_v16 = vpop.permute.xlu0 %218 }
  0x8e   : > { %v234_v17 = vpop.permute.xlu1 %233  ;;  %v224_v18 = vpop.permute.xlu0 %223 }
  0xde   : > { %v461_v19 = vpop.f32.mrf.mxu0  ;;  %v464_v20 = vpop.f32.mrf.mxu1 }
  0xdf   : > { %v321_v21 = vadd.f32 %v461_v19, %v224_v18  ;;  %v331_v22 = vadd.f32 %v464_v20, %v234_v17 }
  0xe0   : > { %v315_v23 = vpop.f32.mrf.mxu0  ;;  %v325_v24 = vpop.f32.mrf.mxu1 }
  0xe1   : > { %336 = vst.msk [vmem:[%s201_s16 + $0x8] sm:$0xff] %vm334_vm1, %v321_v21  ;;  %338 = vst.msk [vmem:[%s201_s16 + $0x18] sm:$0xff] %vm334_vm1, %v331_v22  ;;  %v316_v25 = vadd.f32 %v315_v23, %v219_v16  ;;  %v326_v26 = vadd.f32 %v325_v24, %v229_v15 }
  0xe3   : > { %335 = vst.msk [vmem:[%s201_s16] sm:$0xff] %vm334_vm1, %v316_v25  ;;  %337 = vst.msk [vmem:[%s201_s16 + $0x10] sm:$0xff] %vm334_vm1, %v326_v26 }
  0xe4 PF: > { %s13_s14 = sadd.s32 1, %s527_s14   ;;  %s619_s12 = smov %s523_s13 }
  0xe5   : > { %p10_p5 = scmp.ge.s32.totalorder %s13_s14, 4   ;;  %s620_s13 = smov %s622_s15 }
  0xe7   :  { %12 = sbr.rel (!%p10_p5) target bundleno = 2 (0x2), region = 62 }

</bundles_post_ra>
